<compile_context>
chip_gen: v7x
topology: tpu7x:2x2x1
jax: 0.10.0
libtpu: 0.0.40
codegen_flags: <defaults>
</compile_context>

<pallas_src>
import jax
import jax.numpy as jnp
from jax.experimental import pallas as pl
from jax.experimental.pallas import tpu as pltpu


def basicnn_kernel(params_ref, x_ref, o_ref):
    # params_ref lives in SMEM: [w00, b00, w01, w10, b10, w11, final_bias]
    w00 = params_ref[0]
    b00 = params_ref[1]
    w01 = params_ref[2]
    w10 = params_ref[3]
    b10 = params_ref[4]
    w11 = params_ref[5]
    final_bias = params_ref[6]

    # Load in native dtype, compute in f32, cast back on the store.
    x = x_ref[...].astype(jnp.float32)

    top_relu = jnp.maximum(x * w00 + b00, 0.0)
    bottom_relu = jnp.maximum(x * w10 + b10, 0.0)

    # Fold the two output scales into the final accumulate (single pass).
    input_to_final_relu = top_relu * w01 + bottom_relu * w11 + final_bias
    o_ref[...] = jnp.maximum(input_to_final_relu, 0.0).astype(o_ref.dtype)


# ~4 MiB per tile; 2 buffers x (in + out) ≈ 16 MiB double-buffered VMEM.
TARGET_TILE_BYTES = 4 * 1024 * 1024
VMEM_LIMIT_BYTES = 32 * 1024 * 1024


def _choose_tiles(rows, cols, itemsize):
    """Pick (tile_r, tile_c) near TARGET_TILE_BYTES obeying the (8,128) rule."""
    row_bytes = cols * itemsize
    if row_bytes <= TARGET_TILE_BYTES:
        # Common case: block spans the full last dim; tile the row axis.
        tile_c = cols
        max_rows = max(1, TARGET_TILE_BYTES // row_bytes)
        if rows <= 8 or rows <= max_rows:
            tile_r = rows               # single row-block (== full dim)
        else:
            tile_r = max(8, (max_rows // 8) * 8)
    else:
        # Very wide rows (e.g. huge 1-D input): tile the lane axis in
        # 128-multiples instead.
        tile_r = rows if rows <= 8 else 8
        per_row_budget = max(128, TARGET_TILE_BYTES // (tile_r * itemsize))
        tile_c = min(cols, (per_row_budget // 128) * 128)
    return tile_r, tile_c


def basicnn_forward(x, params):
    """Elementwise BasicNN forward for an arbitrarily shaped float tensor.

    x: any shape, float dtype.  params: (7,) float32.
    Returns an array with the same shape and dtype as x.
    """
    orig_shape = x.shape

    # Zero-copy reshape: merge leading dims, keep the last dim intact.
    if x.ndim < 2:
        x2 = x.reshape(1, -1) if x.size > 0 else x.reshape(1, 1)
    else:
        x2 = x.reshape(-1, x.shape[-1])
    rows, cols = x2.shape

    itemsize = jnp.dtype(x.dtype).itemsize
    tile_r, tile_c = _choose_tiles(rows, cols, itemsize)
    grid = (pl.cdiv(rows, tile_r), pl.cdiv(cols, tile_c))

    n = x2.size
    cost = pl.CostEstimate(
        flops=11 * n,
        transcendentals=0,
        bytes_accessed=2 * n * itemsize + 7 * 4,
    )

    out2 = pl.pallas_call(
        basicnn_kernel,
        out_shape=jax.ShapeDtypeStruct((rows, cols), x.dtype),
        grid_spec=pl.GridSpec(
            grid=grid,
            in_specs=[
                # Scalar params: whole (7,) array in SMEM, shared by all tiles.
                pl.BlockSpec(memory_space=pltpu.MemorySpace.SMEM),
                # Input: one (tile_r, tile_c) block per grid step (pipelined);
                # the trailing partial block (if any) is handled by Pallas.
                pl.BlockSpec((tile_r, tile_c), lambda i, j: (i, j)),
            ],
            out_specs=pl.BlockSpec((tile_r, tile_c), lambda i, j: (i, j)),
        ),
        compiler_params=pltpu.CompilerParams(
            dimension_semantics=("parallel", "parallel"),
            vmem_limit_bytes=VMEM_LIMIT_BYTES,
        ),
        cost_estimate=cost,
    )(params, x2)

    return out2.reshape(orig_shape)


def make_params():
    # Deterministic parameters, exactly as in BasicNN.__init__.
    return jnp.array(
        [1.7, -0.85, -40.8, 12.6, 0.0, 2.7, -16.0], dtype=jnp.float32
    )


def reference_forward(x, p):
    # Pure-JAX reference mirroring the PyTorch forward (computed in f32).
    xf = x.astype(jnp.float32)
    w00, b00, w01, w10, b10, w11, fb = [p[i] for i in range(7)]
    top = jnp.maximum(xf * w00 + b00, 0.0) * w01
    bot = jnp.maximum(xf * w10 + b10, 0.0) * w11
    return jnp.maximum(top + bot + fb, 0.0).astype(x.dtype)


if __name__ == "__main__":
    params = make_params()
    key = jax.random.PRNGKey(0)

    # Small elementwise input (doses in [0, 1] as in the StatQuest example).
    x_small = jax.random.uniform(key, (2, 4, 16, 16), dtype=jnp.float32)
    out_small = jax.block_until_ready(basicnn_forward(x_small, params))
    ref_small = reference_forward(x_small, params)
    assert out_small.shape == x_small.shape and out_small.dtype == x_small.dtype
    assert jnp.allclose(out_small, ref_small, atol=1e-5, rtol=1e-5)

    # Small non-128-aligned last dim (full-dim block path) in bf16 to exercise
    # the in-kernel native-dtype load / f32 compute / native-dtype store.
    x_bf16 = jax.random.uniform(
        jax.random.PRNGKey(0), (12, 700), dtype=jnp.float32
    ).astype(jnp.bfloat16)
    out_bf16 = jax.block_until_ready(basicnn_forward(x_bf16, params))
    ref_bf16 = reference_forward(x_bf16, params)
    assert out_bf16.shape == x_bf16.shape and out_bf16.dtype == jnp.bfloat16
    assert jnp.allclose(
        out_bf16.astype(jnp.float32), ref_bf16.astype(jnp.float32),
        atol=5e-2, rtol=5e-2,
    )

    print("KERNEL_OK")
</pallas_src>

<mosaic_0001>
module attributes {stable_mosaic.version = 11 : i64} {
  func.func @basicnn_kernel(%arg0: i32, %arg1: i32, %arg2: memref<7xf32, #tpu.memory_space<smem>>, %arg3: memref<128x16xf32, #tpu.memory_space<vmem>>, %arg4: memref<128x16xf32, #tpu.memory_space<vmem>>) attributes {dimension_semantics = [#tpu.dimension_semantics<parallel>, #tpu.dimension_semantics<parallel>], iteration_bounds = array<i64: 1, 1>, scalar_prefetch = 0 : i64, scratch_operands = 0 : i64, tpu.core_type = #tpu.core_type<tc>, window_params = [{transform_indices = @transform_0, window_bounds = array<i64: 7>}, {transform_indices = @transform_1, window_bounds = array<i64: 128, 16>}, {transform_indices = @transform_2, window_bounds = array<i64: 128, 16>}]} {
    %c0 = arith.constant 0 : index
    %0 = memref.load %arg2[%c0] : memref<7xf32, #tpu.memory_space<smem>>
    %c1 = arith.constant 1 : index
    %1 = memref.load %arg2[%c1] : memref<7xf32, #tpu.memory_space<smem>>
    %c2 = arith.constant 2 : index
    %2 = memref.load %arg2[%c2] : memref<7xf32, #tpu.memory_space<smem>>
    %c3 = arith.constant 3 : index
    %3 = memref.load %arg2[%c3] : memref<7xf32, #tpu.memory_space<smem>>
    %c4 = arith.constant 4 : index
    %4 = memref.load %arg2[%c4] : memref<7xf32, #tpu.memory_space<smem>>
    %c5 = arith.constant 5 : index
    %5 = memref.load %arg2[%c5] : memref<7xf32, #tpu.memory_space<smem>>
    %c6 = arith.constant 6 : index
    %6 = memref.load %arg2[%c6] : memref<7xf32, #tpu.memory_space<smem>>
    %c0_0 = arith.constant 0 : index
    %c0_1 = arith.constant 0 : index
    %7 = vector.load %arg3[%c0_0, %c0_1] : memref<128x16xf32, #tpu.memory_space<vmem>>, vector<128x16xf32>
    %8 = vector.broadcast %0 : f32 to vector<128x16xf32>
    %9 = arith.mulf %7, %8 : vector<128x16xf32>
    %10 = vector.broadcast %1 : f32 to vector<128x16xf32>
    %11 = arith.addf %9, %10 : vector<128x16xf32>
    %cst = arith.constant 0.000000e+00 : f32
    %12 = vector.broadcast %cst : f32 to vector<128x16xf32>
    %13 = arith.maximumf %11, %12 : vector<128x16xf32>
    %14 = vector.broadcast %3 : f32 to vector<128x16xf32>
    %15 = arith.mulf %7, %14 : vector<128x16xf32>
    %16 = vector.broadcast %4 : f32 to vector<128x16xf32>
    %17 = arith.addf %15, %16 : vector<128x16xf32>
    %cst_2 = arith.constant 0.000000e+00 : f32
    %18 = vector.broadcast %cst_2 : f32 to vector<128x16xf32>
    %19 = arith.maximumf %17, %18 : vector<128x16xf32>
    %20 = vector.broadcast %2 : f32 to vector<128x16xf32>
    %21 = arith.mulf %13, %20 : vector<128x16xf32>
    %22 = vector.broadcast %5 : f32 to vector<128x16xf32>
    %23 = arith.mulf %19, %22 : vector<128x16xf32>
    %24 = arith.addf %21, %23 : vector<128x16xf32>
    %25 = vector.broadcast %6 : f32 to vector<128x16xf32>
    %26 = arith.addf %24, %25 : vector<128x16xf32>
    %cst_3 = arith.constant 0.000000e+00 : f32
    %27 = vector.broadcast %cst_3 : f32 to vector<128x16xf32>
    %28 = arith.maximumf %26, %27 : vector<128x16xf32>
    %c0_4 = arith.constant 0 : index
    %c0_5 = arith.constant 0 : index
    %29 = vector.load %arg4[%c0_4, %c0_5] : memref<128x16xf32, #tpu.memory_space<vmem>>, vector<128x16xf32>
    tpu.vector_store %arg4[%c0_4, %c0_5], %28 {strides = array<i32>} : memref<128x16xf32, #tpu.memory_space<vmem>>, vector<128x16xf32>,
    return
  }
  func.func @transform_0(%arg0: i32, %arg1: i32) -> i32 {
    %c0_i32 = arith.constant 0 : i32
    %c0_i32_0 = arith.constant 0 : i32
    return %c0_i32 : i32
  }
  func.func @transform_1(%arg0: i32, %arg1: i32) -> (i32, i32) {
    %c0_i32 = arith.constant 0 : i32
    return %arg0, %arg1 : i32, i32
  }
  func.func @transform_2(%arg0: i32, %arg1: i32) -> (i32, i32) {
    %c0_i32 = arith.constant 0 : i32
    return %arg0, %arg1 : i32, i32
  }
}

</mosaic_0001>

<bundles_post_ra>
// kernel: tpu_custom_call.1
= control target key start
LH: loop header
LB: loop body
LE: loop exit
PB: predicated region body
PF: predicated region fallthrough
CT: control target
= control target key end

     0   :  { %7 = vsyncpa [#allocation3], 0  ;;  %s530_s0 = inlined_call_operand.vmem [shape: f32[7], index: 0, kind: input, shape index: {}]   ;;  %s531_s1 = inlined_call_operand.vmem [shape: f32[128,16], index: 1, kind: input, shape index: {}]   ;;  %s532_s2 = inlined_call_operand.vmem [shape: f32[128,16], index: 2, kind: output, shape index: {}]  }
   0x1   :  { %s14_s11 = sshll.u32 %s530_s0, 4  ;;  %s15_s11 = int_to_ptr.vmem [resolvable:$true] %s14_s11 }
   0x2   :  { %s259_s12 = scalar_lea.vmem %s15_s11, 16  ;;  %p264_p1 = scmp.lt.s32.totalorder %s15_s11, %s15_s11 }
   0x3   :  { %p260_p0 = scmp.ne.s32.totalorder %s15_s11, %s259_s12  ;;  %p265_p2 = scmp.lt.s32.totalorder %s259_s12, %s259_s12 }
   0x5   :  { %p266_p3 = por %p265_p2, %p264_p1 }
   0x7   :  { %p267_p4 = pnand %p266_p3, %p260_p0 }
   0x9   :  { %270 = shalt.err (!%p267_p4)
}
   0xa   :  { %s273_s13 = smov [#allocation2]  }
   0xb   :  { %17 = dma.vmem_to_smem %s15_s11, 16, %s273_s13, [#allocation3]  }
   0xc   :  { %271 = dma.done.wait [#allocation3], 16  }
   0xd   :  { %272 = vsyncadd [#allocation3], 4294967280 }
   0xe   :  { %23 = sfence }
   0xf   :  { %s24_s14 = sld [smem:[#allocation2]]  ;;  %s252_s15 = sld [smem:[#allocation2 + $0x1]]  ;;  %v31_v0 = vld [vmem:[%s531_s1] sm:$0xff]  ;;  %v32_v1 = vld [vmem:[%s531_s1 + $0x8] sm:$0xff]  ;;  %v33_v4 = vld [vmem:[%s531_s1 + $0x10] sm:$0xff]  ;;  %vm230_vm0 = vcmask 130048  }
  0x10   :  { %s253_s16 = sld [smem:[#allocation2 + $0x2]]  ;;  %s254_s17 = sld [smem:[#allocation2 + $0x3]]  ;;  %v34_v9 = vld [vmem:[%s531_s1 + $0x18] sm:$0xff]  ;;  %v35_v30 = vld [vmem:[%s531_s1 + $0x20] sm:$0xff]  ;;  %v36_v39 = vld [vmem:[%s531_s1 + $0x28] sm:$0xff] }
  0x11   :  { %s255_s18 = sld [smem:[#allocation2 + $0x4]]  ;;  %s256_s19 = sld [smem:[#allocation2 + $0x5]]  ;;  %v37_v60 = vld [vmem:[%s531_s1 + $0x30] sm:$0xff] }
  0x12   :  { %s257_s0 = sld [smem:[#allocation2 + $0x6]] }
  0x15   :  { %v298_v2 = vstv %s24_s14  ;;  %v300_v3 = vstv %s252_s15 }
  0x16   :  { %v48_v5 = vmul.f32 %v298_v2, %v31_v0  ;;  %v306_v6 = vstv %s254_s17  ;;  %v308_v7 = vstv %s253_s16  ;;  %v49_v8 = vmul.f32 %v298_v2, %v32_v1 }
  0x17   :  { %v98_v10 = vmul.f32 %v306_v6, %v31_v0  ;;  %v315_v11 = vstv %s255_s18  ;;  %v317_v12 = vstv %s256_s19  ;;  %v99_v13 = vmul.f32 %v306_v6, %v32_v1  ;;  %v38_v1 = vld [vmem:[%s531_s1 + $0x38] sm:$0xff] }
  0x18   :  { %v65_v14 = vadd.f32 %v300_v3, %v48_v5  ;;  %v321_v15 = vstv %s257_s0  ;;  %v66_v16 = vadd.f32 %v300_v3, %v49_v8  ;;  %v50_v17 = vmul.f32 %v298_v2, %v33_v4 }
  0x19   :  { %v115_v18 = vadd.f32 %v315_v11, %v98_v10  ;;  %v116_v19 = vadd.f32 %v315_v11, %v99_v13  ;;  %v100_v20 = vmul.f32 %v306_v6, %v33_v4  ;;  %v51_v21 = vmul.f32 %v298_v2, %v34_v9 }
  0x1a   :  { %v81_v22 = vmax.f32 %v65_v14, 0.0  ;;  %v82_v23 = vmax.f32 %v66_v16, 0.0  ;;  %v67_v24 = vadd.f32 %v300_v3, %v50_v17  ;;  %v101_v25 = vmul.f32 %v306_v6, %v34_v9  ;;  %v39_v17 = vld [vmem:[%s531_s1 + $0x40] sm:$0xff] }
  0x1b   :  { %v131_v26 = vmax.f32 %v115_v18, 0.0  ;;  %v132_v27 = vmax.f32 %v116_v19, 0.0  ;;  %v117_v28 = vadd.f32 %v315_v11, %v100_v20  ;;  %v68_v29 = vadd.f32 %v300_v3, %v51_v21 }
  0x1c   :  { %v148_v31 = vmul.f32 %v308_v7, %v81_v22  ;;  %v149_v32 = vmul.f32 %v308_v7, %v82_v23  ;;  %v83_v33 = vmax.f32 %v67_v24, 0.0  ;;  %v118_v34 = vadd.f32 %v315_v11, %v101_v25 }
  0x1d   :  { %v165_v35 = vmul.f32 %v317_v12, %v131_v26  ;;  %v166_v36 = vmul.f32 %v317_v12, %v132_v27  ;;  %v133_v37 = vmax.f32 %v117_v28, 0.0  ;;  %v84_v38 = vmax.f32 %v68_v29, 0.0 }
  0x1e   :  { %v150_v40 = vmul.f32 %v308_v7, %v83_v33  ;;  %v134_v41 = vmax.f32 %v118_v34, 0.0  ;;  %v52_v42 = vmul.f32 %v298_v2, %v35_v30  ;;  %v102_v43 = vmul.f32 %v306_v6, %v35_v30  ;;  %v40_v34 = vld [vmem:[%s531_s1 + $0x48] sm:$0xff] }
  0x1f   :  { %v181_v44 = vadd.f32 %v165_v35, %v148_v31  ;;  %v182_v45 = vadd.f32 %v166_v36, %v149_v32  ;;  %v167_v46 = vmul.f32 %v317_v12, %v133_v37  ;;  %v151_v47 = vmul.f32 %v308_v7, %v84_v38 }
  0x20   :  { %v168_v48 = vmul.f32 %v317_v12, %v134_v41  ;;  %v69_v49 = vadd.f32 %v300_v3, %v52_v42  ;;  %v119_v50 = vadd.f32 %v315_v11, %v102_v43  ;;  %v53_v51 = vmul.f32 %v298_v2, %v36_v39  ;;  %v41_v43 = vld [vmem:[%s531_s1 + $0x50] sm:$0xff] }
  0x21   :  { %v198_v52 = vadd.f32 %v321_v15, %v181_v44  ;;  %v199_v53 = vadd.f32 %v321_v15, %v182_v45  ;;  %v183_v54 = vadd.f32 %v167_v46, %v150_v40  ;;  %v103_v55 = vmul.f32 %v306_v6, %v36_v39 }
  0x22   :  { %v184_v56 = vadd.f32 %v168_v48, %v151_v47  ;;  %v85_v57 = vmax.f32 %v69_v49, 0.0  ;;  %v135_v58 = vmax.f32 %v119_v50, 0.0  ;;  %v70_v59 = vadd.f32 %v300_v3, %v53_v51 }
  0x23   :  { %v214_v61 = vmax.f32 %v198_v52, 0.0  ;;  %v215_v62 = vmax.f32 %v199_v53, 0.0  ;;  %v200_v63 = vadd.f32 %v321_v15, %v183_v54  ;;  %v120_v0 = vadd.f32 %v315_v11, %v103_v55  ;;  %v42_v52 = vld [vmem:[%s531_s1 + $0x58] sm:$0xff] }
  0x24   :  { %v201_v4 = vadd.f32 %v321_v15, %v184_v56  ;;  %v152_v5 = vmul.f32 %v308_v7, %v85_v57  ;;  %v169_v8 = vmul.f32 %v317_v12, %v135_v58  ;;  %v86_v9 = vmax.f32 %v70_v59, 0.0 }
  0x25   :  { %231 = vst.msk [vmem:[%s532_s2] sm:$0xff] %vm230_vm0, %v214_v61  ;;  %232 = vst.msk [vmem:[%s532_s2 + $0x8] sm:$0xff] %vm230_vm0, %v215_v62  ;;  %v216_v10 = vmax.f32 %v200_v63, 0.0  ;;  %v136_v13 = vmax.f32 %v120_v0, 0.0  ;;  %v54_v14 = vmul.f32 %v298_v2, %v37_v60  ;;  %v104_v16 = vmul.f32 %v306_v6, %v37_v60 }
  0x26   :  { %v217_v18 = vmax.f32 %v201_v4, 0.0  ;;  %v185_v19 = vadd.f32 %v169_v8, %v152_v5  ;;  %v153_v20 = vmul.f32 %v308_v7, %v86_v9  ;;  %v55_v21 = vmul.f32 %v298_v2, %v38_v1  ;;  %v43_v9 = vld [vmem:[%s531_s1 + $0x60] sm:$0xff] }
  0x27   :  { %233 = vst.msk [vmem:[%s532_s2 + $0x10] sm:$0xff] %vm230_vm0, %v216_v10  ;;  %v170_v22 = vmul.f32 %v317_v12, %v136_v13  ;;  %v71_v23 = vadd.f32 %v300_v3, %v54_v14  ;;  %v121_v24 = vadd.f32 %v315_v11, %v104_v16  ;;  %v105_v25 = vmul.f32 %v306_v6, %v38_v1 }
  0x28   :  { %234 = vst.msk [vmem:[%s532_s2 + $0x18] sm:$0xff] %vm230_vm0, %v217_v18  ;;  %v202_v26 = vadd.f32 %v321_v15, %v185_v19  ;;  %v72_v27 = vadd.f32 %v300_v3, %v55_v21  ;;  %v56_v28 = vmul.f32 %v298_v2, %v39_v17  ;;  %v106_v29 = vmul.f32 %v306_v6, %v39_v17  ;;  %v44_v21 = vld [vmem:[%s531_s1 + $0x68] sm:$0xff] }
  0x29   :  { %v186_v30 = vadd.f32 %v170_v22, %v153_v20  ;;  %v87_v31 = vmax.f32 %v71_v23, 0.0  ;;  %v137_v32 = vmax.f32 %v121_v24, 0.0  ;;  %v122_v33 = vadd.f32 %v315_v11, %v105_v25 }
  0x2a   :  { %v218_v35 = vmax.f32 %v202_v26, 0.0  ;;  %v88_v36 = vmax.f32 %v72_v27, 0.0  ;;  %v73_v37 = vadd.f32 %v300_v3, %v56_v28  ;;  %v123_v38 = vadd.f32 %v315_v11, %v106_v29 }
  0x2b   :  { %v203_v39 = vadd.f32 %v321_v15, %v186_v30  ;;  %v154_v40 = vmul.f32 %v308_v7, %v87_v31  ;;  %v171_v41 = vmul.f32 %v317_v12, %v137_v32  ;;  %v138_v42 = vmax.f32 %v122_v33, 0.0  ;;  %v45_v30 = vld [vmem:[%s531_s1 + $0x70] sm:$0xff] }
  0x2c   :  { %235 = vst.msk [vmem:[%s532_s2 + $0x20] sm:$0xff] %vm230_vm0, %v218_v35  ;;  %v155_v44 = vmul.f32 %v308_v7, %v88_v36  ;;  %v89_v45 = vmax.f32 %v73_v37, 0.0  ;;  %v139_v46 = vmax.f32 %v123_v38, 0.0  ;;  %v57_v47 = vmul.f32 %v298_v2, %v40_v34 }
  0x2d   :  { %v219_v48 = vmax.f32 %v203_v39, 0.0  ;;  %v187_v49 = vadd.f32 %v171_v41, %v154_v40  ;;  %v172_v50 = vmul.f32 %v317_v12, %v138_v42  ;;  %v107_v51 = vmul.f32 %v306_v6, %v40_v34 }
  0x2e   :  { %v156_v53 = vmul.f32 %v308_v7, %v89_v45  ;;  %v173_v54 = vmul.f32 %v317_v12, %v139_v46  ;;  %v74_v55 = vadd.f32 %v300_v3, %v57_v47  ;;  %v58_v56 = vmul.f32 %v298_v2, %v41_v43  ;;  %v46_v47 = vld [vmem:[%s531_s1 + $0x78] sm:$0xff] }
  0x2f   :  { %236 = vst.msk [vmem:[%s532_s2 + $0x28] sm:$0xff] %vm230_vm0, %v219_v48  ;;  %v204_v57 = vadd.f32 %v321_v15, %v187_v49  ;;  %v188_v58 = vadd.f32 %v172_v50, %v155_v44  ;;  %v124_v59 = vadd.f32 %v315_v11, %v107_v51  ;;  %v108_v60 = vmul.f32 %v306_v6, %v41_v43 }
  0x30   :  { %v189_v61 = vadd.f32 %v173_v54, %v156_v53  ;;  %v90_v62 = vmax.f32 %v74_v55, 0.0  ;;  %v75_v63 = vadd.f32 %v300_v3, %v58_v56  ;;  %v59_v0 = vmul.f32 %v298_v2, %v42_v52 }
  0x31   :  { %v220_v1 = vmax.f32 %v204_v57, 0.0  ;;  %v205_v4 = vadd.f32 %v321_v15, %v188_v58  ;;  %v140_v5 = vmax.f32 %v124_v59, 0.0  ;;  %v125_v8 = vadd.f32 %v315_v11, %v108_v60 }
  0x32   :  { %v206_v10 = vadd.f32 %v321_v15, %v189_v61  ;;  %v157_v13 = vmul.f32 %v308_v7, %v90_v62  ;;  %v91_v14 = vmax.f32 %v75_v63, 0.0  ;;  %v76_v16 = vadd.f32 %v300_v3, %v59_v0 }
  0x33   :  { %237 = vst.msk [vmem:[%s532_s2 + $0x30] sm:$0xff] %vm230_vm0, %v220_v1  ;;  %v221_v17 = vmax.f32 %v205_v4, 0.0  ;;  %v174_v18 = vmul.f32 %v317_v12, %v140_v5  ;;  %v141_v19 = vmax.f32 %v125_v8, 0.0  ;;  %v109_v20 = vmul.f32 %v306_v6, %v42_v52 }
  0x34   :  { %v222_v22 = vmax.f32 %v206_v10, 0.0  ;;  %v158_v23 = vmul.f32 %v308_v7, %v91_v14  ;;  %v92_v24 = vmax.f32 %v76_v16, 0.0  ;;  %v60_v25 = vmul.f32 %v298_v2, %v43_v9 }
  0x35   :  { %238 = vst.msk [vmem:[%s532_s2 + $0x38] sm:$0xff] %vm230_vm0, %v221_v17  ;;  %v190_v26 = vadd.f32 %v174_v18, %v157_v13  ;;  %v175_v27 = vmul.f32 %v317_v12, %v141_v19  ;;  %v126_v28 = vadd.f32 %v315_v11, %v109_v20  ;;  %v110_v29 = vmul.f32 %v306_v6, %v43_v9 }
  0x36   :  { %239 = vst.msk [vmem:[%s532_s2 + $0x40] sm:$0xff] %vm230_vm0, %v222_v22  ;;  %v159_v31 = vmul.f32 %v308_v7, %v92_v24  ;;  %v77_v32 = vadd.f32 %v300_v3, %v60_v25  ;;  %v61_v33 = vmul.f32 %v298_v2, %v44_v21  ;;  %v111_v34 = vmul.f32 %v306_v6, %v44_v21 }
  0x37   :  { %v207_v35 = vadd.f32 %v321_v15, %v190_v26  ;;  %v191_v36 = vadd.f32 %v175_v27, %v158_v23  ;;  %v142_v37 = vmax.f32 %v126_v28, 0.0  ;;  %v127_v38 = vadd.f32 %v315_v11, %v110_v29 }
  0x38   :  { %v93_v39 = vmax.f32 %v77_v32, 0.0  ;;  %v78_v40 = vadd.f32 %v300_v3, %v61_v33  ;;  %v128_v41 = vadd.f32 %v315_v11, %v111_v34  ;;  %v62_v42 = vmul.f32 %v298_v2, %v45_v30 }
  0x39   :  { %v223_v43 = vmax.f32 %v207_v35, 0.0  ;;  %v208_v44 = vadd.f32 %v321_v15, %v191_v36  ;;  %v176_v45 = vmul.f32 %v317_v12, %v142_v37  ;;  %v143_v46 = vmax.f32 %v127_v38, 0.0 }
  0x3a   :  { %v160_v48 = vmul.f32 %v308_v7, %v93_v39  ;;  %v94_v49 = vmax.f32 %v78_v40, 0.0  ;;  %v144_v50 = vmax.f32 %v128_v41, 0.0  ;;  %v79_v51 = vadd.f32 %v300_v3, %v62_v42 }
  0x3b   :  { %240 = vst.msk [vmem:[%s532_s2 + $0x48] sm:$0xff] %vm230_vm0, %v223_v43  ;;  %v224_v52 = vmax.f32 %v208_v44, 0.0  ;;  %v192_v53 = vadd.f32 %v176_v45, %v159_v31  ;;  %v177_v54 = vmul.f32 %v317_v12, %v143_v46  ;;  %v112_v55 = vmul.f32 %v306_v6, %v45_v30 }
  0x3c   :  { %v161_v56 = vmul.f32 %v308_v7, %v94_v49  ;;  %v178_v57 = vmul.f32 %v317_v12, %v144_v50  ;;  %v95_v58 = vmax.f32 %v79_v51, 0.0  ;;  %v63_v59 = vmul.f32 %v298_v2, %v46_v47 }
  0x3d   :  { %241 = vst.msk [vmem:[%s532_s2 + $0x50] sm:$0xff] %vm230_vm0, %v224_v52  ;;  %v209_v60 = vadd.f32 %v321_v15, %v192_v53  ;;  %v193_v61 = vadd.f32 %v177_v54, %v160_v48  ;;  %v129_v62 = vadd.f32 %v315_v11, %v112_v55  ;;  %v113_v63 = vmul.f32 %v306_v6, %v46_v47 }
  0x3e   :  { %v194_v0 = vadd.f32 %v178_v57, %v161_v56  ;;  %v162_v1 = vmul.f32 %v308_v7, %v95_v58  ;;  %v80_v4 = vadd.f32 %v300_v3, %v63_v59 }
  0x3f   :  { %v225_v5 = vmax.f32 %v209_v60, 0.0  ;;  %v210_v2 = vadd.f32 %v321_v15, %v193_v61  ;;  %v145_v8 = vmax.f32 %v129_v62, 0.0  ;;  %v130_v9 = vadd.f32 %v315_v11, %v113_v63 }
  0x40   :  { %v211_v10 = vadd.f32 %v321_v15, %v194_v0  ;;  %v96_v13 = vmax.f32 %v80_v4, 0.0 }
  0x41   :  { %242 = vst.msk [vmem:[%s532_s2 + $0x58] sm:$0xff] %vm230_vm0, %v225_v5  ;;  %v226_v6 = vmax.f32 %v210_v2, 0.0  ;;  %v179_v14 = vmul.f32 %v317_v12, %v145_v8  ;;  %v146_v16 = vmax.f32 %v130_v9, 0.0 }
  0x42   :  { %v227_v17 = vmax.f32 %v211_v10, 0.0  ;;  %v163_v3 = vmul.f32 %v308_v7, %v96_v13 }
  0x43   :  { %243 = vst.msk [vmem:[%s532_s2 + $0x60] sm:$0xff] %vm230_vm0, %v226_v6  ;;  %v195_v11 = vadd.f32 %v179_v14, %v162_v1  ;;  %v180_v18 = vmul.f32 %v317_v12, %v146_v16 }
  0x44   :  { %244 = vst.msk [vmem:[%s532_s2 + $0x68] sm:$0xff] %vm230_vm0, %v227_v17 }
  0x45   :  { %v212_v19 = vadd.f32 %v321_v15, %v195_v11  ;;  %v196_v20 = vadd.f32 %v180_v18, %v163_v3 }
  0x47   :  { %v228_v21 = vmax.f32 %v212_v19, 0.0  ;;  %v213_v22 = vadd.f32 %v321_v15, %v196_v20 }
  0x49   :  { %245 = vst.msk [vmem:[%s532_s2 + $0x70] sm:$0xff] %vm230_vm0, %v228_v21  ;;  %v229_v7 = vmax.f32 %v213_v22, 0.0 }
  0x4b   :  { %246 = vst.msk [vmem:[%s532_s2 + $0x78] sm:$0xff] %vm230_vm0, %v229_v7 }
  0x4c   :  { %251 = vsyncpa [#allocation3], 1 }

</bundles_post_ra>
